<compile_context>
chip_gen: v5e
topology: v5e:2x2
jax: 0.10.0
libtpu: 0.0.40
codegen_flags: <defaults>
</compile_context>

<pallas_src>
import jax
import jax.numpy as jnp
from jax.experimental import pallas as pl
from jax.experimental.pallas import tpu as pltpu


def _make_encoder_kernel(kernel_sizes, seq_len):
    """Fused multi-layer (conv + folded-BN + ReLU) kernel body.

    Ref layout per grid step (one batch element):
      x_ref                       : (1, C_in0, L)          input activations (NCL slice)
      refs[2l], refs[2l+1]        : (K_l, C_out_l, C_in_l) scale-folded weights,
                                    (C_out_l, 1)           folded BN shift
      refs[2n + l]                : (1, C_out_l, L)        per-layer output (NCL slice)
      refs[3n]                    : (C_max, L + 2*pad_max) VMEM staging buffer (halo)
    """
    n_layers = len(kernel_sizes)
    L = seq_len

    def kernel(x_ref, *refs):
        w_refs = [refs[2 * l] for l in range(n_layers)]
        s_refs = [refs[2 * l + 1] for l in range(n_layers)]
        o_refs = [refs[2 * n_layers + l] for l in range(n_layers)]
        pad_buf = refs[3 * n_layers]

        h = x_ref[0].astype(jnp.float32)                     # (C_prev, L)
        for l in range(n_layers):
            K = kernel_sizes[l]
            pad = (K - 1) // 2
            c_prev = h.shape[0]
            c_out = s_refs[l].shape[0]

            # Stage zero-padded activation (halo of `pad` zeros on each side).
            pad_buf[...] = jnp.zeros_like(pad_buf)
            pad_buf[0:c_prev, pad:pad + L] = h

            w = w_refs[l][...]                               # (K, c_out, c_prev)
            acc = jnp.zeros((c_out, L), jnp.float32)
            for k in range(K):                               # K small MXU dots, no im2col
                acc = acc + jnp.dot(
                    w[k], pad_buf[0:c_prev, k:k + L],
                    preferred_element_type=jnp.float32)

            h = jnp.maximum(acc + s_refs[l][...], 0.0)       # folded-BN shift + ReLU
            o_refs[l][0] = h.astype(o_refs[l].dtype)         # lane-dense NCL store

    return kernel


def encoder_forward(x_ncl, params, eps=1e-5):
    """Matches Encoder.forward: returns (final_x, [per-layer outputs]) in NCL."""
    N, C_in, L = x_ncl.shape
    n_layers = len(params)

    kernel_sizes = []
    out_channels = []
    kernel_args = [x_ncl.astype(jnp.float32)]
    in_specs = [pl.BlockSpec((1, C_in, L), lambda n: (n, 0, 0))]

    c_prev = C_in
    max_c_in = C_in
    max_pad = 0
    for p in params:
        w = p["weight"]                                      # (C_out, C_in_l, K) PyTorch layout
        C_out, c_in_l, K = w.shape
        assert c_in_l == c_prev, "channel mismatch between layers"
        assert K % 2 == 1, "even kernel sizes not supported (asymmetric 'same' padding)"
        pad = (K - 1) // 2
        max_pad = max(max_pad, pad)
        max_c_in = max(max_c_in, c_prev)

        # Fold BN (inference) into the conv: y = conv(x) * scale + shift.
        inv_std = 1.0 / jnp.sqrt(p["run_var"].astype(jnp.float32) + eps)
        scale = p["gamma"].astype(jnp.float32) * inv_std                   # (C_out,)
        shift = p["beta"].astype(jnp.float32) - p["run_mean"].astype(jnp.float32) * scale
        w_scaled = w.astype(jnp.float32) * scale[:, None, None]            # scale folded into weight
        w_koc = jnp.transpose(w_scaled, (2, 0, 1))                         # (K, C_out, C_in)

        kernel_args.append(w_koc)
        kernel_args.append(shift.reshape(C_out, 1))
        in_specs.append(pl.BlockSpec((K, C_out, c_prev), lambda n: (0, 0, 0)))
        in_specs.append(pl.BlockSpec((C_out, 1), lambda n: (0, 0)))

        kernel_sizes.append(K)
        out_channels.append(C_out)
        c_prev = C_out

    out_shapes = tuple(jax.ShapeDtypeStruct((N, c, L), jnp.float32) for c in out_channels)
    out_specs = tuple(pl.BlockSpec((1, c, L), lambda n: (n, 0, 0)) for c in out_channels)
    scratch_shapes = [pltpu.VMEM((max_c_in, L + 2 * max_pad), jnp.float32)]

    kernel = _make_encoder_kernel(tuple(kernel_sizes), L)
    outs = pl.pallas_call(
        kernel,
        out_shape=out_shapes,
        grid=(N,),
        in_specs=in_specs,
        out_specs=out_specs,
        scratch_shapes=scratch_shapes,
        compiler_params=pltpu.CompilerParams(
            dimension_semantics=("parallel",)),
    )(*kernel_args)

    outs = list(outs)
    return outs[-1], outs


def encoder_reference(x_ncl, params, eps=1e-5):
    """Pure-JAX reference (conv + inference BN + ReLU) for correctness checking."""
    x = x_ncl.astype(jnp.float32)
    outs = []
    for p in params:
        w = p["weight"].astype(jnp.float32)                  # (C_out, C_in, K)
        K = w.shape[-1]
        pad = (K - 1) // 2
        y = jax.lax.conv_general_dilated(
            x, w, window_strides=(1,), padding=[(pad, pad)],
            dimension_numbers=("NCH", "OIH", "NCH"))
        inv_std = 1.0 / jnp.sqrt(p["run_var"].astype(jnp.float32) + eps)
        scale = p["gamma"].astype(jnp.float32) * inv_std
        shift = p["beta"].astype(jnp.float32) - p["run_mean"].astype(jnp.float32) * scale
        y = y * scale[None, :, None] + shift[None, :, None]
        x = jnp.maximum(y, 0.0)
        outs.append(x)
    return outs[-1], outs


def init_encoder_params(key, in_channels, encoder_architecture):
    """Deterministic parameter init mirroring the PyTorch module's shapes."""
    params = []
    c_in = in_channels
    for (c_out, k) in encoder_architecture:
        key, kw, kg, kb, km, kv = jax.random.split(key, 6)
        params.append(dict(
            weight=jax.random.normal(kw, (c_out, c_in, k), jnp.float32) * 0.1,
            gamma=1.0 + 0.1 * jax.random.normal(kg, (c_out,), jnp.float32),
            beta=0.1 * jax.random.normal(kb, (c_out,), jnp.float32),
            run_mean=0.1 * jax.random.normal(km, (c_out,), jnp.float32),
            run_var=jax.random.uniform(kv, (c_out,), jnp.float32, 0.5, 1.5),
        ))
        c_in = c_out
    return params


if __name__ == "__main__":
    # Small shapes consistent with the module: 1D conv over sequences (NCL).
    N, C_in, L = 2, 4, 16
    encoder_architecture = [(8, 3), (16, 5), (32, 3)]

    key = jax.random.PRNGKey(0)
    key, kx = jax.random.split(key)
    x = jax.random.normal(kx, (N, C_in, L), jnp.float32)
    params = init_encoder_params(key, C_in, encoder_architecture)

    fwd = jax.jit(encoder_forward)
    final_x, outputs = fwd(x, params)
    final_x = jax.block_until_ready(final_x)
    outputs = [jax.block_until_ready(o) for o in outputs]

    # Shape checks (padding='same', stride 1, no max-pool).
    expected = [(N, c, L) for (c, _) in encoder_architecture]
    assert [tuple(o.shape) for o in outputs] == expected, \
        f"got {[o.shape for o in outputs]}, expected {expected}"
    assert tuple(final_x.shape) == expected[-1]

    # Numerical check against a pure-JAX reference.
    ref_final, ref_outputs = encoder_reference(x, params)
    for o, r in zip(outputs, ref_outputs):
        err = float(jnp.max(jnp.abs(o - r)))
        assert err < 1e-3, f"max abs error {err} too large"
    assert float(jnp.max(jnp.abs(final_x - ref_final))) < 1e-3

    print("KERNEL_OK")
</pallas_src>

<mosaic_0001>
module attributes {stable_mosaic.version = 11 : i64} {
  func.func @kernel(%arg0: i32, %arg1: memref<1x4x16xf32, #tpu.memory_space<vmem>>, %arg2: memref<3x8x4xf32, #tpu.memory_space<vmem>>, %arg3: memref<8x1xf32, #tpu.memory_space<vmem>>, %arg4: memref<5x16x8xf32, #tpu.memory_space<vmem>>, %arg5: memref<16x1xf32, #tpu.memory_space<vmem>>, %arg6: memref<3x32x16xf32, #tpu.memory_space<vmem>>, %arg7: memref<32x1xf32, #tpu.memory_space<vmem>>, %arg8: memref<1x8x16xf32, #tpu.memory_space<vmem>>, %arg9: memref<1x16x16xf32, #tpu.memory_space<vmem>>, %arg10: memref<1x32x16xf32, #tpu.memory_space<vmem>>, %arg11: memref<16x20xf32, #tpu.memory_space<vmem>>) attributes {dimension_semantics = [#tpu.dimension_semantics<parallel>], iteration_bounds = array<i64: 2>, scalar_prefetch = 0 : i64, scratch_operands = 1 : i64, tpu.core_type = #tpu.core_type<tc>, window_params = [{transform_indices = @transform_0, window_bounds = array<i64: 1, 4, 16>}, {pipeline_mode = #tpu.pipeline_mode<synchronous>, transform_indices = @transform_1, window_bounds = array<i64: 3, 8, 4>}, {pipeline_mode = #tpu.pipeline_mode<synchronous>, transform_indices = @transform_2, window_bounds = array<i64: 8, 1>}, {pipeline_mode = #tpu.pipeline_mode<synchronous>, transform_indices = @transform_3, window_bounds = array<i64: 5, 16, 8>}, {pipeline_mode = #tpu.pipeline_mode<synchronous>, transform_indices = @transform_4, window_bounds = array<i64: 16, 1>}, {pipeline_mode = #tpu.pipeline_mode<synchronous>, transform_indices = @transform_5, window_bounds = array<i64: 3, 32, 16>}, {pipeline_mode = #tpu.pipeline_mode<synchronous>, transform_indices = @transform_6, window_bounds = array<i64: 32, 1>}, {transform_indices = @transform_7, window_bounds = array<i64: 1, 8, 16>}, {transform_indices = @transform_8, window_bounds = array<i64: 1, 16, 16>}, {transform_indices = @transform_9, window_bounds = array<i64: 1, 32, 16>}]} {
    %c0 = arith.constant 0 : index
    %c0_0 = arith.constant 0 : index
    %c0_1 = arith.constant 0 : index
    %0 = vector.load %arg1[%c0, %c0_0, %c0_1] : memref<1x4x16xf32, #tpu.memory_space<vmem>>, vector<1x4x16xf32>
    %1 = vector.shape_cast %0 : vector<1x4x16xf32> to vector<4x16xf32>
    %cst = arith.constant 0.000000e+00 : f32
    %2 = vector.broadcast %cst : f32 to vector<16x20xf32>
    %c0_2 = arith.constant 0 : index
    %c0_3 = arith.constant 0 : index
    %3 = vector.load %arg11[%c0_2, %c0_3] : memref<16x20xf32, #tpu.memory_space<vmem>>, vector<16x20xf32>
    tpu.vector_store %arg11[%c0_2, %c0_3], %2 {strides = array<i32>} : memref<16x20xf32, #tpu.memory_space<vmem>>, vector<16x20xf32>,
    %c0_4 = arith.constant 0 : index
    %c1 = arith.constant 1 : index
    %4 = vector.load %arg11[%c0_4, %c1] : memref<16x20xf32, #tpu.memory_space<vmem>>, vector<4x16xf32>
    tpu.vector_store %arg11[%c0_4, %c1], %1 {strides = array<i32>} : memref<16x20xf32, #tpu.memory_space<vmem>>, vector<4x16xf32>,
    %c0_5 = arith.constant 0 : index
    %c0_6 = arith.constant 0 : index
    %c0_7 = arith.constant 0 : index
    %5 = vector.load %arg2[%c0_5, %c0_6, %c0_7] : memref<3x8x4xf32, #tpu.memory_space<vmem>>, vector<3x8x4xf32>
    %cst_8 = arith.constant 0.000000e+00 : f32
    %6 = vector.broadcast %cst_8 : f32 to vector<8x16xf32>
    %7 = vector.extract_strided_slice %5 {offsets = [0, 0, 0], sizes = [1, 8, 4], strides = [1, 1, 1]} : vector<3x8x4xf32> to vector<1x8x4xf32>
    %8 = vector.shape_cast %7 : vector<1x8x4xf32> to vector<8x4xf32>
    %c0_9 = arith.constant 0 : index
    %c0_10 = arith.constant 0 : index
    %9 = vector.load %arg11[%c0_9, %c0_10] : memref<16x20xf32, #tpu.memory_space<vmem>>, vector<4x16xf32>
    %cst_11 = arith.constant dense<0.000000e+00> : vector<8x16xf32>
    %10 = tpu.matmul %8, %9, %cst_11 {dimension_numbers = #tpu.dot_dimension_numbers<[1], [0], [0], [1], [0, 0, 1, 1], [], []>} : vector<8x4xf32>, vector<4x16xf32>, vector<8x16xf32> -> vector<8x16xf32>
    %11 = arith.addf %6, %10 : vector<8x16xf32>
    %12 = vector.extract_strided_slice %5 {offsets = [1, 0, 0], sizes = [1, 8, 4], strides = [1, 1, 1]} : vector<3x8x4xf32> to vector<1x8x4xf32>
    %13 = vector.shape_cast %12 : vector<1x8x4xf32> to vector<8x4xf32>
    %c0_12 = arith.constant 0 : index
    %c1_13 = arith.constant 1 : index
    %14 = vector.load %arg11[%c0_12, %c1_13] : memref<16x20xf32, #tpu.memory_space<vmem>>, vector<4x16xf32>
    %cst_14 = arith.constant dense<0.000000e+00> : vector<8x16xf32>
    %15 = tpu.matmul %13, %14, %cst_14 {dimension_numbers = #tpu.dot_dimension_numbers<[1], [0], [0], [1], [0, 0, 1, 1], [], []>} : vector<8x4xf32>, vector<4x16xf32>, vector<8x16xf32> -> vector<8x16xf32>
    %16 = arith.addf %11, %15 : vector<8x16xf32>
    %17 = vector.extract_strided_slice %5 {offsets = [2, 0, 0], sizes = [1, 8, 4], strides = [1, 1, 1]} : vector<3x8x4xf32> to vector<1x8x4xf32>
    %18 = vector.shape_cast %17 : vector<1x8x4xf32> to vector<8x4xf32>
    %c0_15 = arith.constant 0 : index
    %c2 = arith.constant 2 : index
    %19 = vector.load %arg11[%c0_15, %c2] : memref<16x20xf32, #tpu.memory_space<vmem>>, vector<4x16xf32>
    %cst_16 = arith.constant dense<0.000000e+00> : vector<8x16xf32>
    %20 = tpu.matmul %18, %19, %cst_16 {dimension_numbers = #tpu.dot_dimension_numbers<[1], [0], [0], [1], [0, 0, 1, 1], [], []>} : vector<8x4xf32>, vector<4x16xf32>, vector<8x16xf32> -> vector<8x16xf32>
    %21 = arith.addf %16, %20 : vector<8x16xf32>
    %c0_17 = arith.constant 0 : index
    %c0_18 = arith.constant 0 : index
    %22 = vector.load %arg3[%c0_17, %c0_18] : memref<8x1xf32, #tpu.memory_space<vmem>>, vector<8x1xf32>
    %23 = vector.broadcast %22 : vector<8x1xf32> to vector<8x16xf32>
    %24 = arith.addf %21, %23 : vector<8x16xf32>
    %cst_19 = arith.constant 0.000000e+00 : f32
    %25 = vector.broadcast %cst_19 : f32 to vector<8x16xf32>
    %26 = arith.maximumf %24, %25 : vector<8x16xf32>
    %c0_20 = arith.constant 0 : index
    %c0_21 = arith.constant 0 : index
    %c0_22 = arith.constant 0 : index
    %27 = vector.load %arg8[%c0_20, %c0_21, %c0_22] : memref<1x8x16xf32, #tpu.memory_space<vmem>>, vector<1x8x16xf32>
    %28 = vector.shape_cast %27 : vector<1x8x16xf32> to vector<8x16xf32>
    %29 = vector.shape_cast %26 : vector<8x16xf32> to vector<1x8x16xf32>
    tpu.vector_store %arg8[%c0_20, %c0_21, %c0_22], %29 {strides = array<i32>} : memref<1x8x16xf32, #tpu.memory_space<vmem>>, vector<1x8x16xf32>,
    %cst_23 = arith.constant 0.000000e+00 : f32
    %30 = vector.broadcast %cst_23 : f32 to vector<16x20xf32>
    %c0_24 = arith.constant 0 : index
    %c0_25 = arith.constant 0 : index
    %31 = vector.load %arg11[%c0_24, %c0_25] : memref<16x20xf32, #tpu.memory_space<vmem>>, vector<16x20xf32>
    tpu.vector_store %arg11[%c0_24, %c0_25], %30 {strides = array<i32>} : memref<16x20xf32, #tpu.memory_space<vmem>>, vector<16x20xf32>,
    %c0_26 = arith.constant 0 : index
    %c2_27 = arith.constant 2 : index
    %32 = vector.load %arg11[%c0_26, %c2_27] : memref<16x20xf32, #tpu.memory_space<vmem>>, vector<8x16xf32>
    tpu.vector_store %arg11[%c0_26, %c2_27], %26 {strides = array<i32>} : memref<16x20xf32, #tpu.memory_space<vmem>>, vector<8x16xf32>,
    %c0_28 = arith.constant 0 : index
    %c0_29 = arith.constant 0 : index
    %c0_30 = arith.constant 0 : index
    %33 = vector.load %arg4[%c0_28, %c0_29, %c0_30] : memref<5x16x8xf32, #tpu.memory_space<vmem>>, vector<5x16x8xf32>
    %cst_31 = arith.constant 0.000000e+00 : f32
    %34 = vector.broadcast %cst_31 : f32 to vector<16x16xf32>
    %35 = vector.extract_strided_slice %33 {offsets = [0, 0, 0], sizes = [1, 16, 8], strides = [1, 1, 1]} : vector<5x16x8xf32> to vector<1x16x8xf32>
    %36 = vector.shape_cast %35 : vector<1x16x8xf32> to vector<16x8xf32>
    %c0_32 = arith.constant 0 : index
    %c0_33 = arith.constant 0 : index
    %37 = vector.load %arg11[%c0_32, %c0_33] : memref<16x20xf32, #tpu.memory_space<vmem>>, vector<8x16xf32>
    %cst_34 = arith.constant dense<0.000000e+00> : vector<16x16xf32>
    %38 = tpu.matmul %36, %37, %cst_34 {dimension_numbers = #tpu.dot_dimension_numbers<[1], [0], [0], [1], [0, 0, 1, 1], [], []>} : vector<16x8xf32>, vector<8x16xf32>, vector<16x16xf32> -> vector<16x16xf32>
    %39 = arith.addf %34, %38 : vector<16x16xf32>
    %40 = vector.extract_strided_slice %33 {offsets = [1, 0, 0], sizes = [1, 16, 8], strides = [1, 1, 1]} : vector<5x16x8xf32> to vector<1x16x8xf32>
    %41 = vector.shape_cast %40 : vector<1x16x8xf32> to vector<16x8xf32>
    %c0_35 = arith.constant 0 : index
    %c1_36 = arith.constant 1 : index
    %42 = vector.load %arg11[%c0_35, %c1_36] : memref<16x20xf32, #tpu.memory_space<vmem>>, vector<8x16xf32>
    %cst_37 = arith.constant dense<0.000000e+00> : vector<16x16xf32>
    %43 = tpu.matmul %41, %42, %cst_37 {dimension_numbers = #tpu.dot_dimension_numbers<[1], [0], [0], [1], [0, 0, 1, 1], [], []>} : vector<16x8xf32>, vector<8x16xf32>, vector<16x16xf32> -> vector<16x16xf32>
    %44 = arith.addf %39, %43 : vector<16x16xf32>
    %45 = vector.extract_strided_slice %33 {offsets = [2, 0, 0], sizes = [1, 16, 8], strides = [1, 1, 1]} : vector<5x16x8xf32> to vector<1x16x8xf32>
    %46 = vector.shape_cast %45 : vector<1x16x8xf32> to vector<16x8xf32>
    %c0_38 = arith.constant 0 : index
    %c2_39 = arith.constant 2 : index
    %47 = vector.load %arg11[%c0_38, %c2_39] : memref<16x20xf32, #tpu.memory_space<vmem>>, vector<8x16xf32>
    %cst_40 = arith.constant dense<0.000000e+00> : vector<16x16xf32>
    %48 = tpu.matmul %46, %47, %cst_40 {dimension_numbers = #tpu.dot_dimension_numbers<[1], [0], [0], [1], [0, 0, 1, 1], [], []>} : vector<16x8xf32>, vector<8x16xf32>, vector<16x16xf32> -> vector<16x16xf32>
    %49 = arith.addf %44, %48 : vector<16x16xf32>
    %50 = vector.extract_strided_slice %33 {offsets = [3, 0, 0], sizes = [1, 16, 8], strides = [1, 1, 1]} : vector<5x16x8xf32> to vector<1x16x8xf32>
    %51 = vector.shape_cast %50 : vector<1x16x8xf32> to vector<16x8xf32>
    %c0_41 = arith.constant 0 : index
    %c3 = arith.constant 3 : index
    %52 = vector.load %arg11[%c0_41, %c3] : memref<16x20xf32, #tpu.memory_space<vmem>>, vector<8x16xf32>
    %cst_42 = arith.constant dense<0.000000e+00> : vector<16x16xf32>
    %53 = tpu.matmul %51, %52, %cst_42 {dimension_numbers = #tpu.dot_dimension_numbers<[1], [0], [0], [1], [0, 0, 1, 1], [], []>} : vector<16x8xf32>, vector<8x16xf32>, vector<16x16xf32> -> vector<16x16xf32>
    %54 = arith.addf %49, %53 : vector<16x16xf32>
    %55 = vector.extract_strided_slice %33 {offsets = [4, 0, 0], sizes = [1, 16, 8], strides = [1, 1, 1]} : vector<5x16x8xf32> to vector<1x16x8xf32>
    %56 = vector.shape_cast %55 : vector<1x16x8xf32> to vector<16x8xf32>
    %c0_43 = arith.constant 0 : index
    %c4 = arith.constant 4 : index
    %57 = vector.load %arg11[%c0_43, %c4] : memref<16x20xf32, #tpu.memory_space<vmem>>, vector<8x16xf32>
    %cst_44 = arith.constant dense<0.000000e+00> : vector<16x16xf32>
    %58 = tpu.matmul %56, %57, %cst_44 {dimension_numbers = #tpu.dot_dimension_numbers<[1], [0], [0], [1], [0, 0, 1, 1], [], []>} : vector<16x8xf32>, vector<8x16xf32>, vector<16x16xf32> -> vector<16x16xf32>
    %59 = arith.addf %54, %58 : vector<16x16xf32>
    %c0_45 = arith.constant 0 : index
    %c0_46 = arith.constant 0 : index
    %60 = vector.load %arg5[%c0_45, %c0_46] : memref<16x1xf32, #tpu.memory_space<vmem>>, vector<16x1xf32>
    %61 = vector.broadcast %60 : vector<16x1xf32> to vector<16x16xf32>
    %62 = arith.addf %59, %61 : vector<16x16xf32>
    %cst_47 = arith.constant 0.000000e+00 : f32
    %63 = vector.broadcast %cst_47 : f32 to vector<16x16xf32>
    %64 = arith.maximumf %62, %63 : vector<16x16xf32>
    %c0_48 = arith.constant 0 : index
    %c0_49 = arith.constant 0 : index
    %c0_50 = arith.constant 0 : index
    %65 = vector.load %arg9[%c0_48, %c0_49, %c0_50] : memref<1x16x16xf32, #tpu.memory_space<vmem>>, vector<1x16x16xf32>
    %66 = vector.shape_cast %65 : vector<1x16x16xf32> to vector<16x16xf32>
    %67 = vector.shape_cast %64 : vector<16x16xf32> to vector<1x16x16xf32>
    tpu.vector_store %arg9[%c0_48, %c0_49, %c0_50], %67 {strides = array<i32>} : memref<1x16x16xf32, #tpu.memory_space<vmem>>, vector<1x16x16xf32>,
    %cst_51 = arith.constant 0.000000e+00 : f32
    %68 = vector.broadcast %cst_51 : f32 to vector<16x20xf32>
    %c0_52 = arith.constant 0 : index
    %c0_53 = arith.constant 0 : index
    %69 = vector.load %arg11[%c0_52, %c0_53] : memref<16x20xf32, #tpu.memory_space<vmem>>, vector<16x20xf32>
    tpu.vector_store %arg11[%c0_52, %c0_53], %68 {strides = array<i32>} : memref<16x20xf32, #tpu.memory_space<vmem>>, vector<16x20xf32>,
    %c0_54 = arith.constant 0 : index
    %c1_55 = arith.constant 1 : index
    %70 = vector.load %arg11[%c0_54, %c1_55] : memref<16x20xf32, #tpu.memory_space<vmem>>, vector<16x16xf32>
    tpu.vector_store %arg11[%c0_54, %c1_55], %64 {strides = array<i32>} : memref<16x20xf32, #tpu.memory_space<vmem>>, vector<16x16xf32>,
    %c0_56 = arith.constant 0 : index
    %c0_57 = arith.constant 0 : index
    %c0_58 = arith.constant 0 : index
    %71 = vector.load %arg6[%c0_56, %c0_57, %c0_58] : memref<3x32x16xf32, #tpu.memory_space<vmem>>, vector<3x32x16xf32>
    %cst_59 = arith.constant 0.000000e+00 : f32
    %72 = vector.broadcast %cst_59 : f32 to vector<32x16xf32>
    %73 = vector.extract_strided_slice %71 {offsets = [0, 0, 0], sizes = [1, 32, 16], strides = [1, 1, 1]} : vector<3x32x16xf32> to vector<1x32x16xf32>
    %74 = vector.shape_cast %73 : vector<1x32x16xf32> to vector<32x16xf32>
    %c0_60 = arith.constant 0 : index
    %c0_61 = arith.constant 0 : index
    %75 = vector.load %arg11[%c0_60, %c0_61] : memref<16x20xf32, #tpu.memory_space<vmem>>, vector<16x16xf32>
    %cst_62 = arith.constant dense<0.000000e+00> : vector<32x16xf32>
    %76 = tpu.matmul %74, %75, %cst_62 {dimension_numbers = #tpu.dot_dimension_numbers<[1], [0], [0], [1], [0, 0, 1, 1], [], []>} : vector<32x16xf32>, vector<16x16xf32>, vector<32x16xf32> -> vector<32x16xf32>
    %77 = arith.addf %72, %76 : vector<32x16xf32>
    %78 = vector.extract_strided_slice %71 {offsets = [1, 0, 0], sizes = [1, 32, 16], strides = [1, 1, 1]} : vector<3x32x16xf32> to vector<1x32x16xf32>
    %79 = vector.shape_cast %78 : vector<1x32x16xf32> to vector<32x16xf32>
    %c0_63 = arith.constant 0 : index
    %c1_64 = arith.constant 1 : index
    %80 = vector.load %arg11[%c0_63, %c1_64] : memref<16x20xf32, #tpu.memory_space<vmem>>, vector<16x16xf32>
    %cst_65 = arith.constant dense<0.000000e+00> : vector<32x16xf32>
    %81 = tpu.matmul %79, %80, %cst_65 {dimension_numbers = #tpu.dot_dimension_numbers<[1], [0], [0], [1], [0, 0, 1, 1], [], []>} : vector<32x16xf32>, vector<16x16xf32>, vector<32x16xf32> -> vector<32x16xf32>
    %82 = arith.addf %77, %81 : vector<32x16xf32>
    %83 = vector.extract_strided_slice %71 {offsets = [2, 0, 0], sizes = [1, 32, 16], strides = [1, 1, 1]} : vector<3x32x16xf32> to vector<1x32x16xf32>
    %84 = vector.shape_cast %83 : vector<1x32x16xf32> to vector<32x16xf32>
    %c0_66 = arith.constant 0 : index
    %c2_67 = arith.constant 2 : index
    %85 = vector.load %arg11[%c0_66, %c2_67] : memref<16x20xf32, #tpu.memory_space<vmem>>, vector<16x16xf32>
    %cst_68 = arith.constant dense<0.000000e+00> : vector<32x16xf32>
    %86 = tpu.matmul %84, %85, %cst_68 {dimension_numbers = #tpu.dot_dimension_numbers<[1], [0], [0], [1], [0, 0, 1, 1], [], []>} : vector<32x16xf32>, vector<16x16xf32>, vector<32x16xf32> -> vector<32x16xf32>
    %87 = arith.addf %82, %86 : vector<32x16xf32>
    %c0_69 = arith.constant 0 : index
    %c0_70 = arith.constant 0 : index
    %88 = vector.load %arg7[%c0_69, %c0_70] : memref<32x1xf32, #tpu.memory_space<vmem>>, vector<32x1xf32>
    %89 = vector.broadcast %88 : vector<32x1xf32> to vector<32x16xf32>
    %90 = arith.addf %87, %89 : vector<32x16xf32>
    %cst_71 = arith.constant 0.000000e+00 : f32
    %91 = vector.broadcast %cst_71 : f32 to vector<32x16xf32>
    %92 = arith.maximumf %90, %91 : vector<32x16xf32>
    %c0_72 = arith.constant 0 : index
    %c0_73 = arith.constant 0 : index
    %c0_74 = arith.constant 0 : index
    %93 = vector.load %arg10[%c0_72, %c0_73, %c0_74] : memref<1x32x16xf32, #tpu.memory_space<vmem>>, vector<1x32x16xf32>
    %94 = vector.shape_cast %93 : vector<1x32x16xf32> to vector<32x16xf32>
    %95 = vector.shape_cast %92 : vector<32x16xf32> to vector<1x32x16xf32>
    tpu.vector_store %arg10[%c0_72, %c0_73, %c0_74], %95 {strides = array<i32>} : memref<1x32x16xf32, #tpu.memory_space<vmem>>, vector<1x32x16xf32>,
    return
  }
  func.func @transform_0(%arg0: i32) -> (i32, i32, i32) {
    %c0_i32 = arith.constant 0 : i32
    %c0_i32_0 = arith.constant 0 : i32
    %c0_i32_1 = arith.constant 0 : i32
    return %arg0, %c0_i32, %c0_i32_0 : i32, i32, i32
  }
  func.func @transform_1(%arg0: i32) -> (i32, i32, i32) {
    %c0_i32 = arith.constant 0 : i32
    %c0_i32_0 = arith.constant 0 : i32
    %c0_i32_1 = arith.constant 0 : i32
    %c0_i32_2 = arith.constant 0 : i32
    return %c0_i32, %c0_i32_0, %c0_i32_1 : i32, i32, i32
  }
  func.func @transform_2(%arg0: i32) -> (i32, i32) {
    %c0_i32 = arith.constant 0 : i32
    %c0_i32_0 = arith.constant 0 : i32
    %c0_i32_1 = arith.constant 0 : i32
    return %c0_i32, %c0_i32_0 : i32, i32
  }
  func.func @transform_3(%arg0: i32) -> (i32, i32, i32) {
    %c0_i32 = arith.constant 0 : i32
    %c0_i32_0 = arith.constant 0 : i32
    %c0_i32_1 = arith.constant 0 : i32
    %c0_i32_2 = arith.constant 0 : i32
    return %c0_i32, %c0_i32_0, %c0_i32_1 : i32, i32, i32
  }
  func.func @transform_4(%arg0: i32) -> (i32, i32) {
    %c0_i32 = arith.constant 0 : i32
    %c0_i32_0 = arith.constant 0 : i32
    %c0_i32_1 = arith.constant 0 : i32
    return %c0_i32, %c0_i32_0 : i32, i32
  }
  func.func @transform_5(%arg0: i32) -> (i32, i32, i32) {
    %c0_i32 = arith.constant 0 : i32
    %c0_i32_0 = arith.constant 0 : i32
    %c0_i32_1 = arith.constant 0 : i32
    %c0_i32_2 = arith.constant 0 : i32
    return %c0_i32, %c0_i32_0, %c0_i32_1 : i32, i32, i32
  }
  func.func @transform_6(%arg0: i32) -> (i32, i32) {
    %c0_i32 = arith.constant 0 : i32
    %c0_i32_0 = arith.constant 0 : i32
    %c0_i32_1 = arith.constant 0 : i32
    return %c0_i32, %c0_i32_0 : i32, i32
  }
  func.func @transform_7(%arg0: i32) -> (i32, i32, i32) {
    %c0_i32 = arith.constant 0 : i32
    %c0_i32_0 = arith.constant 0 : i32
    %c0_i32_1 = arith.constant 0 : i32
    return %arg0, %c0_i32, %c0_i32_0 : i32, i32, i32
  }
  func.func @transform_8(%arg0: i32) -> (i32, i32, i32) {
    %c0_i32 = arith.constant 0 : i32
    %c0_i32_0 = arith.constant 0 : i32
    %c0_i32_1 = arith.constant 0 : i32
    return %arg0, %c0_i32, %c0_i32_0 : i32, i32, i32
  }
  func.func @transform_9(%arg0: i32) -> (i32, i32, i32) {
    %c0_i32 = arith.constant 0 : i32
    %c0_i32_0 = arith.constant 0 : i32
    %c0_i32_1 = arith.constant 0 : i32
    return %arg0, %c0_i32, %c0_i32_0 : i32, i32, i32
  }
}

</mosaic_0001>

<bundles_post_ra>
// kernel: encoder_forward.1
= control target key start
LH: loop header
LB: loop body
LE: loop exit
PB: predicated region body
PF: predicated region fallthrough
CT: control target
= control target key end

     0   :  { %s1557_s0 = inlined_call_operand.vmem [shape: f32[2,4,16], index: 0, kind: input, shape index: {}]   ;;  %s1558_s1 = inlined_call_operand.vmem [shape: f32[3,8,4], index: 1, kind: input, shape index: {}]   ;;  %s1559_s2 = inlined_call_operand.vmem [shape: f32[8,1], index: 2, kind: input, shape index: {}]   ;;  %s1560_s3 = inlined_call_operand.vmem [shape: f32[5,16,8], index: 3, kind: input, shape index: {}]   ;;  %s1561_s4 = inlined_call_operand.vmem [shape: f32[16,1], index: 4, kind: input, shape index: {}]   ;;  %s1562_s5 = inlined_call_operand.vmem [shape: f32[3,32,16], index: 5, kind: input, shape index: {}]   ;;  %s1563_s6 = inlined_call_operand.vmem [shape: f32[32,1], index: 6, kind: input, shape index: {}]   ;;  %s1564_s7 = inlined_call_operand.hbm [shape: f32[2,8,16], index: 7, kind: output, shape index: {0}]   ;;  %s1565_s8 = inlined_call_operand.hbm [shape: f32[2,16,16], index: 8, kind: output, shape index: {1}]   ;;  %s1566_s9 = inlined_call_operand.vmem [shape: f32[2,32,16], index: 9, kind: output, shape index: {2}]  }
   0x1   :  { %1570 = sst [smem:[#allocation9_spill]] %s1557_s0 }
   0x2   :  { %1571 = sst [smem:[#allocation10_spill]] %s1558_s1 }
   0x3   :  { %1572 = sst [smem:[#allocation11_spill]] %s1559_s2 }
   0x4   :  { %1573 = sst [smem:[#allocation12_spill]] %s1560_s3 }
   0x5   :  { %1574 = sst [smem:[#allocation13_spill]] %s1561_s4 }
   0x6   :  { %1575 = sst [smem:[#allocation14_spill]] %s1562_s5 }
   0x7   :  { %15 = vsyncpa [#allocation4], 0 }
   0x8   :  { %17 = vsyncpa [#allocation4 + $0x1], 0 }
   0x9   :  { %18 = vsyncpa [#allocation6], 0 }
   0xa   :  { %20 = vsyncpa [#allocation6 + $0x1], 0  ;;  %s1296_s30 = smov 0   ;;  %s1298_s10 = smov 0  }
   0xb   :  { %s1300_s11 = smov 0   ;;  %s1302_s12 = smov 0  }
   0xc LB: > { %s1317_s13 = sadd.s32 4294967295, %s1234_s12   ;;  %s1027_s14 = sadd.s32 4294967294, %s1234_s12   ;;  %s1234_s12 = sphi %s1302_s12, %s1589_s12   ;;  %s1230_s11 = sphi %s1300_s11, %s1588_s11   ;;  %s1226_s10 = sphi %s1298_s10, %s1587_s10   ;;  %s1222_s30 = sphi %s1296_s30, %s1586_s30  }
   0xd   : > { %s1321_s15 = sadd.s32 1, %s1234_s12   ;;  %s185_s16 = sadd.s32 1, %s1230_s11 }
   0xe   : > { %s182_s17 = ssub.s32 %s1234_s12, %s1321_s15  ;;  %p195_p0 = scmp.ne.s32.totalorder %s1230_s11, %s1226_s10 }
   0xf   : > { %p183_p1 = scmp.eq.s32.totalorder %s182_s17, 0  ;;  %p196_p2 = scmp.eq.s32.totalorder %s1317_s13, 1 }
  0x10   : > { %p201_p3 = scmp.ne.s32.totalorder %s1226_s10, %s1222_s30  ;;  %p202_p4 = scmp.eq.s32.totalorder %s1027_s14, 1 }
  0x11   : > { %s1332_s18 = scalar_select %p183_p1, %s1230_s11, %s185_s16  }
  0x12   : > { %p1334_p5 = por %p196_p2, %p195_p0  ;;  %p1338_p6 = por %p202_p4, %p201_p3 }
  0x13   : > { %p1030_p7 = scmp.ge.s32.totalorder %s1234_s12, 1  ;;  %p297_p8 = scmp.lt.s32.totalorder %s1234_s12, 3 }
  0x15   : > { %p298_p9 = pnand %p1030_p7, %p297_p8 }
  0x16   : > { %p342_p10 = scmp.lt.s32.totalorder (!%p298_p9), %s1317_s13, 1  ;;  %s1578_s0 = sld [smem:[#allocation9_spill]] (!%p298_p9) }
  0x17   : > { %301 = sbr.rel (%p298_p9) target bundleno = 1179 (0x49b), region = 48  ;;  %s1567_s26 = smov (!%p298_p9), 1  }
  0x18   : > { %s1238_s27 = smov (!%p298_p9), 126   ;;  %s1569_s28 = smov (!%p298_p9), 127  }
  0x19   : > { %s1579_s2 = sld [smem:[#allocation11_spill]] (!%p298_p9)  ;;  %s1373_s29 = sand.u32 (!%p298_p9), 1, %s1226_s10  }
  0x1a   : > { %s1580_s1 = sld [smem:[#allocation10_spill]] (!%p298_p9)  ;;  %s1031_s14 = sshll.u32 (!%p298_p9), %s1373_s29, 3 }
  0x1b   : > { %s1241_s16 = smov (!%p298_p9), 2   ;;  %s1376_s17 = scalar_lea.vmem (!%p298_p9), [#allocation3], %s1031_s14 }
  0x1c   : > { %vm352_vm0 = vcmask 162816   ;;  %v1236_v0 = vmov 0.0   ;;  %s1347_s21 = scalar_select %p342_p10, %s1317_s13, 1  ;;  %vm359_vm1 = vcmask 134152   ;;  %v1240_v5 = vmov 0   ;;  %v828_v60 = vld [vmem:[%s1563_s6] sm:$0xff] }
  0x1d   : > { %353 = vst.msk [vmem:[#allocation2] sm:$0xff] %vm352_vm0, %v1236_v0  ;;  %1127 = vset.pattern.permute.xlu1 %v1240_v5  ;;  %1128 = vset.pattern.permute.xlu0 %v1240_v5  ;;  %vm372_vm2 = vcmask 1043456   ;;  %vm368_vm3 = vcmask 31744   ;;  %vm456_vm4 = vcmask 130048   ;;  %vm464_vm5 = vcmask 146448   ;;  %s1243_s23 = smov 125  }
  0x1e   : > { %354 = vst.msk [vmem:[#allocation2 + $0x8] sm:$0xff] %vm352_vm0, %v1236_v0  ;;  %s1033_s22 = sshll.u32 %s1347_s21, 2  ;;  %1139 = vset.pattern.permute.xlu2 %v1240_v5  ;;  %s1581_s4 = sld [smem:[#allocation13_spill]]  ;;  %vm481_vm6 = vcmask 64512   ;;  %v831_v62 = vld [vmem:[%s1563_s6 + $0x18] sm:$0xff]  ;;  %vm670_vm7 = vcmask 138248  }
  0x1f   : > { %459 = vst.msk [vmem:[#allocation2 + $0x8] sm:$0xff] %vm352_vm0, %v1236_v0  ;;  %s345_s25 = scalar_lea.vmem %s1578_s0, %s1033_s22  ;;  %v448_v4 = vld [vmem:[%s1579_s2] sm:$0xff]  ;;  %s1242_s22 = smov 124  }
  0x20   : > { %661 = vst.msk [vmem:[#allocation2 + $0x8] sm:$0xff] %vm352_vm0, %v1236_v0  ;;  %v351_v1 = vld [vmem:[%s345_s25] sm:$0xf]  ;;  %v362_v6 = vld [vmem:[%s1580_s1 + $0x8] sm:$0xff]  ;;  %v363_v7 = vld [vmem:[%s1580_s1 + $0x10] sm:$0xff]  ;;  %s1582_s3 = sld [smem:[#allocation12_spill]] }
  0x21   : > { %356 = vrot.lane.b32.xlu0 %v351_v1, %s1567_s26  ;;  %v361_v10 = vld [vmem:[%s1580_s1] sm:$0xff]  ;;  %s1032_s24 = sshll.u32 %s1373_s29, 4  ;;  %s1583_s14 = smov 1  }
  0x22   : > { %s1430_s25 = scalar_lea.vmem [#allocation5], %s1032_s24  ;;  %s1585_s5 = sld [smem:[#allocation14_spill]] }
  0x23   : > { %s1160_s0 = scalar_lea.hbm %s1564_s7, 16 }
  0x24   : > { %v642_v21 = vld [vmem:[%s1581_s4] sm:$0xff]  ;;  %v643_v26 = vld [vmem:[%s1581_s4 + $0x8] sm:$0xff]  ;;  %s865_s4 = scalar_lea.sflag [#allocation4], %s1373_s29 }
  0x26   : > { %v466_v22 = vld [vmem:[%s1582_s3] sm:$0xff]  ;;  %v467_v23 = vld [vmem:[%s1582_s3 + $0x8] sm:$0xff]  ;;  %v468_v24 = vld [vmem:[%s1582_s3 + $0x10] sm:$0xff] }
  0x27   : > { %v469_v27 = vld [vmem:[%s1582_s3 + $0x18] sm:$0xff]  ;;  %v470_v28 = vld [vmem:[%s1582_s3 + $0x20] sm:$0xff]  ;;  %v471_v30 = vld [vmem:[%s1582_s3 + $0x28] sm:$0xff] }
  0x28   : > { %v472_v31 = vld [vmem:[%s1582_s3 + $0x30] sm:$0xff]  ;;  %v474_v32 = vld [vmem:[%s1582_s3 + $0x40] sm:$0xff]  ;;  %v473_v35 = vld [vmem:[%s1582_s3 + $0x38] sm:$0xff] }
  0x29   : > { %v475_v36 = vld [vmem:[%s1582_s3 + $0x48] sm:$0xff]  ;;  %v673_v5 = vld [vmem:[%s1585_s5] sm:$0xff] }
  0x93   : > { %v357_v2 = vpop.permute.xlu0 %356 }
  0x94   : > { %360 = vst.msk [vmem:[#allocation2] sm:$0xf] %vm359_vm1, %v357_v2 }
  0x9b   : > { %v364_v3 = vld [vmem:[#allocation2] sm:$0xf] }
  0x9c   : > { %420 = vrot.lane.b32.xlu1 %v364_v3, %s1238_s27  ;;  %458 = vst.msk [vmem:[#allocation2] sm:$0xff] %vm352_vm0, %v1236_v0  ;;  %366 = vrot.lane.b32.xlu0 %v364_v3, %s1569_s28 }
  0xa4   : > { %451 = vperm.xlu1 %1127, %v448_v4   ;;  %v830_v4 = vld [vmem:[%s1563_s6 + $0x10] sm:$0xff] }
 0x10e   : > { %v421_v8 = vpop.permute.xlu1 %420  ;;  %v367_v9 = vpop.permute.xlu0 %366 }
 0x10f   : > { %1036 = vmatpush.msk.msra.mxu3 %vm372_vm2, %v367_v9  ;;  %1040 = vmatpush.msk.msra.mxu2 %vm372_vm2, %v421_v8  ;;  %v681_v9 = vld [vmem:[%s1585_s5 + $0x40] sm:$0xff] }
 0x110   : > { %1037 = vmatmul.msk.f32.vlgmr.msra.gmra.mxu3 %vm368_vm3, %v362_v6  ;;  %1041 = vmatmul.msk.f32.vlgmr.msra.gmra.mxu2 %vm368_vm3, %v363_v7 }
 0x111   : > { %1038 = vmatpush.msk.msrb.mxu3 %vm372_vm2, %v364_v3 }
 0x116   : > { %v452_v15 = vpop.permute.xlu1 %451 }
 0x118   : > { %1039 = vmatmul.msk.f32.vlgmr.msrb.gmra.mxu3 %vm368_vm3, %v361_v10  ;;  %v674_v10 = vld [vmem:[%s1585_s5 + $0x8] sm:$0xff] }
 0x193   : > { %v392_v11 = vpop.f32.mrf.mxu3  ;;  %v444_v13 = vpop.f32.mrf.mxu2 }
 0x19b   : > { %v417_v12 = vpop.f32.mrf.mxu3 }
 0x19c   : > { %v418_v14 = vadd.f32 %v417_v12, %v392_v11  ;;  %v682_v11 = vld [vmem:[%s1585_s5 + $0x48] sm:$0xff]  ;;  %v675_v12 = vld [vmem:[%s1585_s5 + $0x10] sm:$0xff] }
 0x19e   : > { %v447_v16 = vadd.f32 %v444_v13, %v418_v14  ;;  %v683_v13 = vld [vmem:[%s1585_s5 + $0x50] sm:$0xff]  ;;  %v676_v14 = vld [vmem:[%s1585_s5 + $0x18] sm:$0xff] }
 0x1a0   : > { %v454_v17 = vadd.f32 %v452_v15, %v447_v16  ;;  %v829_v15 = vld [vmem:[%s1563_s6 + $0x8] sm:$0xff] }
 0x1a2   : > { %v455_v18 = vmax.f32 %v454_v17, 0.0 }
 0x1a4   : > { %461 = vrot.lane.b32.xlu2 %v455_v18, %s1241_s16  ;;  %457 = vst.msk [vmem:[%s1376_s17] sm:$0xff] %vm456_vm4, %v455_v18 }
 0x1fe   : > { %v462_v19 = vpop.permute.xlu2 %461 }
 0x1ff   : > { %465 = vst.msk [vmem:[#allocation2] sm:$0xff] %vm464_vm5, %v462_v19  ;;  %v677_v19 = vld [vmem:[%s1585_s5 + $0x20] sm:$0xff] }
 0x206   : > { %v476_v20 = vld [vmem:[#allocation2] sm:$0xff] }
 0x207   : > { %608 = vrot.lane.b32.xlu1 %v476_v20, %s1242_s22  ;;  %660 = vst.msk [vmem:[#allocation2] sm:$0xff] %vm352_vm0, %v1236_v0  ;;  %574 = vrot.lane.b32.xlu0 %v476_v20, %s1243_s23  ;;  %s1584_s23 = smov 127   ;;  %s1066_s22 = sshll.u32 %s1317_s13, 3 }
 0x208   : > { %478 = vrot.lane.b32.xlu2 %v476_v20, %s1569_s28  ;;  %532 = vmatpush.msra.mxu0 %v476_v20  ;;  %s1072_s28 = sshll.u32 %s1317_s13, 4 }
 0x209   : > { %1044 = vmatmul.msk.f32.vlgmr.msra.gmra.mxu0 %vm481_vm6, %v466_v22  ;;  %v679_v22 = vld [vmem:[%s1585_s5 + $0x30] sm:$0xff]  ;;  %s900_s24 = scalar_lea.hbm %s1565_s8, %s1072_s28 }
 0x20f   : > { %646 = vperm.xlu1 %1127, %v642_v21   ;;  %651 = vperm.xlu0 %1128, %v643_v26   ;;  %v678_v21 = vld [vmem:[%s1585_s5 + $0x28] sm:$0xff] }
 0x210   : > { %540 = vrot.lane.b32.xlu2 %v476_v20, %s1238_s27  ;;  %v684_v20 = vld [vmem:[%s1585_s5 + $0x58] sm:$0xff] }
 0x211   : > { %1045 = vmatmul.msk.f32.gmra.mxu0 %vm481_vm6, %v467_v23  ;;  %v680_v23 = vld [vmem:[%s1585_s5 + $0x38] sm:$0xff] }
 0x262   : > { %v479_v25 = vpop.permute.xlu2 %478 }
 0x263   : > { %503 = vmatpush.msra.mxu3 %v479_v25 }
 0x264   : > { %1042 = vmatmul.msk.f32.vlgmr.msra.gmra.mxu3 %vm481_vm6, %v468_v24 }
 0x26a   : > { %v541_v29 = vpop.permute.xlu2 %540 }
 0x26b   : > { %564 = vmatpush.msra.mxu1 %v541_v29 }
 0x26c   : > { %1043 = vmatmul.msk.f32.gmra.mxu3 %vm481_vm6, %v469_v27  ;;  %1046 = vmatmul.msk.f32.vlgmr.msra.gmra.mxu1 %vm481_vm6, %v470_v28 }
 0x274   : > { %1047 = vmatmul.msk.f32.gmra.mxu1 %vm481_vm6, %v471_v30 }
 0x279   : > { %v609_v33 = vpop.permute.xlu1 %608  ;;  %v575_v34 = vpop.permute.xlu0 %574 }
 0x27a   : > { %598 = vmatpush.msrb.mxu2 %v575_v34  ;;  %632 = vmatpush.msrb.mxu3 %v609_v33 }
 0x27b   : > { %1048 = vmatmul.msk.f32.vlgmr.msrb.gmra.mxu2 %vm481_vm6, %v472_v31  ;;  %1050 = vmatmul.msk.f32.vlgmr.msrb.gmra.mxu3 %vm481_vm6, %v474_v32 }
 0x281   : > { %v647_v49 = vpop.permute.xlu1 %646  ;;  %v652_v57 = vpop.permute.xlu0 %651 }
 0x283   : > { %1049 = vmatmul.msk.f32.gmra.mxu2 %vm481_vm6, %v473_v35  ;;  %1051 = vmatmul.msk.f32.gmra.mxu3 %vm481_vm6, %v475_v36 }
 0x286   : > { %v534_v38 = vpop.f32.mrf.mxu0 }
 0x28e   : > { %v537_v43 = vpop.f32.mrf.mxu0 }
 0x2e7   : > { %v505_v37 = vpop.f32.mrf.mxu3 }
 0x2e8   : > { %v535_v41 = vadd.f32 %v534_v38, %v505_v37 }
 0x2e9   : > { %v566_v40 = vpop.f32.mrf.mxu1 }
 0x2ea   : > { %v572_v42 = vadd.f32 %v566_v40, %v535_v41 }
 0x2ef   : > { %v508_v39 = vpop.f32.mrf.mxu3 }
 0x2f0   : > { %v538_v47 = vadd.f32 %v537_v43, %v508_v39 }
 0x2f1   : > { %v569_v50 = vpop.f32.mrf.mxu1 }
 0x2f2   : > { %v573_v52 = vadd.f32 %v569_v50, %v538_v47 }
 0x2fe   : > { %v600_v44 = vpop.f32.mrf.mxu2  ;;  %v634_v45 = vpop.f32.mrf.mxu3 }
 0x2ff   : > { %v606_v46 = vadd.f32 %v600_v44, %v572_v42 }
 0x301   : > { %v640_v48 = vadd.f32 %v634_v45, %v606_v46 }
 0x303   : > { %v654_v51 = vadd.f32 %v647_v49, %v640_v48 }
 0x305   : > { %v656_v53 = vmax.f32 %v654_v51, 0.0 }
 0x306   : > { %v603_v54 = vpop.f32.mrf.mxu2  ;;  %v637_v55 = vpop.f32.mrf.mxu3 }
 0x307   : > { %658 = vst.msk [vmem:[%s1430_s25] sm:$0xff] %vm456_vm4, %v656_v53  ;;  %v607_v56 = vadd.f32 %v603_v54, %v573_v52  ;;  %664 = vrot.lane.b32.xlu1 %v656_v53, %s1583_s14 }
 0x309   : > { %v641_v58 = vadd.f32 %v637_v55, %v607_v56 }
 0x30b   : > { %v655_v59 = vadd.f32 %v652_v57, %v641_v58 }
 0x30d   : > { %v657_v61 = vmax.f32 %v655_v59, 0.0 }
 0x30f   : > { %659 = vst.msk [vmem:[%s1430_s25 + $0x8] sm:$0xff] %vm456_vm4, %v657_v61  ;;  %666 = vrot.lane.b32.xlu2 %v657_v61, %s1583_s14  ;;  %834 = vperm.xlu1 %1127, %v828_v60   ;;  %s887_s14 = sshll.u32 %s1376_s17, 4  ;;  %s888_s14 = int_to_ptr.vmem [resolvable:$true] %s887_s14 }
 0x317   : > { %849 = vperm.xlu1 %1127, %v831_v62  }
 0x369   : > { %v667_v63 = vpop.permute.xlu2 %666 }
 0x36a   : > { %672 = vst.msk [vmem:[#allocation2 + $0x8] sm:$0xff] %vm670_vm7, %v667_v63 }
 0x371   : > { %v686_v0 = vld [vmem:[#allocation2 + $0x8] sm:$0xff] }
 0x372   : > { %762 = vmatpush.msrb.mxu1 %v686_v0 }
 0x379   : > { %v665_v1 = vpop.permute.xlu1 %664 }
 0x37a   : > { %671 = vst.msk [vmem:[#allocation2] sm:$0xff] %vm670_vm7, %v665_v1 }
 0x381   : > { %v685_v2 = vld [vmem:[#allocation2] sm:$0xff] }
 0x382   : > { %763 = vmatpush.msrb.mxu1 %v685_v2  ;;  %v1134_v3 = vpack.i.bf16 %v685_v2, %v686_v0 }
 0x383   : > { %1056 = vmatmul.msk.f32.vlgmr.msrb.gmra.mxu1 %vm456_vm4, %v673_v5 }
 0x384   : > { %1135 = vrot.lane.b32.xlu0 %v1134_v3, %s1584_s23  ;;  %1130 = vrot.lane.b32.xlu2 %v1134_v3, %s1238_s27  ;;  %s885_s23 = scalar_lea.hbm %s1564_s7, %s1066_s22 }
 0x385   : > { %s889_s3 = sshll.u32 %s885_s23, 4  ;;  %s890_s3 = int_to_ptr.hbm [resolvable:$true] %s889_s3 }
 0x386   : > { %s1154_s16 = sshra.s32 %s890_s3, 4  ;;  %s1155_s16 = int_to_ptr.hbm [resolvable:$true] %s1154_s16 }
 0x387   : > { %s1156_s26 = scalar_lea.hbm %s1155_s16, 8  ;;  %p1161_p0 = scmp.lt.s32.totalorder %s1155_s16, %s1564_s7 }
 0x388   : > { %p1157_p11 = scmp.ne.s32.totalorder %s1155_s16, %s1156_s26  ;;  %p1162_p1 = scmp.lt.s32.totalorder %s1160_s0, %s1156_s26 }
 0x38a   : > { %p1158_p12 = pnand %p1157_p11, %p1334_p5  ;;  %p1163_p2 = por %p1162_p1, %p1161_p0 }
 0x38b   : > { %1057 = vmatmul.msk.f32.gmra.mxu1 %vm456_vm4, %v674_v10 }
 0x38c   : > { %844 = vperm.xlu0 %1128, %v830_v4   ;;  %839 = vperm.xlu2 %1139, %v829_v15   ;;  %p1159_p13 = pneg %p1158_p12 }
 0x38e   : > { %p1164_p3 = pnand %p1163_p2, %p1159_p13 }
 0x393   : > { %1058 = vmatmul.msk.f32.gmra.mxu1 %vm456_vm4, %v675_v12 }
 0x39b   : > { %1059 = vmatmul.msk.f32.gmra.mxu1 %vm456_vm4, %v676_v14 }
 0x3de   : > { %v1131_v6 = vpop.permute.xlu2 %1130 }
 0x3df   : > { %v1132_v7 = vunpack.i.l.bf16 %v1131_v6  ;;  %v1133_v8 = vunpack.i.h.bf16 %v1131_v6 }
 0x3e1   : > { %809 = vmatpush.msra.mxu2 %v1132_v7 }
 0x3e3   : > { %810 = vmatpush.msra.mxu2 %v1133_v8 }
 0x3e4   : > { %1060 = vmatmul.msk.f32.vlgmr.msra.gmra.mxu2 %vm456_vm4, %v681_v9 }
 0x3ec   : > { %1061 = vmatmul.msk.f32.gmra.mxu2 %vm456_vm4, %v682_v11 }
 0x3f4   : > { %1062 = vmatmul.msk.f32.gmra.mxu2 %vm456_vm4, %v683_v13 }
 0x3f6   : > { %v1136_v16 = vpop.permute.xlu0 %1135 }
 0x3f7   : > { %v1137_v17 = vunpack.i.l.bf16 %v1136_v16  ;;  %v1138_v18 = vunpack.i.h.bf16 %v1136_v16 }
 0x3f9   : > { %721 = vmatpush.msrb.mxu0 %v1137_v17 }
 0x3fb   : > { %722 = vmatpush.msrb.mxu0 %v1138_v18 }
 0x3fc   : > { %1052 = vmatmul.msk.f32.vlgmr.msrb.gmra.mxu0 %vm456_vm4, %v677_v19  ;;  %1063 = vmatmul.msk.f32.gmra.mxu2 %vm456_vm4, %v684_v20 }
 0x404   : > { %1053 = vmatmul.msk.f32.gmra.mxu0 %vm456_vm4, %v678_v21 }
 0x40c   : > { %1054 = vmatmul.msk.f32.gmra.mxu0 %vm456_vm4, %v679_v22 }
 0x414   : > { %1055 = vmatmul.msk.f32.gmra.mxu0 %vm456_vm4, %v680_v23 }
 0x415   : > { %1167 = shalt.err (!%p1164_p3)
}
 0x416   : > { %1073 = dma.vmem_to_hbm [thread:$0]  (%p1334_p5), %s888_s14, 128, %s890_s3, %s865_s4  }
 0x417   : > { %s901_s1 = sshll.u32 %s1430_s25, 4  ;;  %s903_s2 = sshll.u32 %s900_s24, 4  ;;  %s902_s1 = int_to_ptr.vmem [resolvable:$true] %s901_s1  ;;  %s904_s2 = int_to_ptr.hbm [resolvable:$true] %s903_s2 }
 0x418   : > { %s870_s5 = scalar_lea.sflag [#allocation6], %s1373_s29  ;;  %s1182_s17 = sshra.s32 %s904_s2, 4  ;;  %s1183_s17 = int_to_ptr.hbm [resolvable:$true] %s1182_s17 }
 0x419   : > { %s1184_s28 = scalar_lea.hbm %s1183_s17, 16  ;;  %s1188_s26 = scalar_lea.hbm %s1565_s8, 32 }
 0x41a   : > { %p1185_p4 = scmp.ne.s32.totalorder %s1183_s17, %s1184_s28  ;;  %p1189_p9 = scmp.lt.s32.totalorder %s1183_s17, %s1565_s8 }
 0x41b   : > { %p1190_p10 = scmp.lt.s32.totalorder %s1188_s26, %s1184_s28 }
 0x41c   : > { %p1186_p7 = pnand %p1185_p4, %p1334_p5 }
 0x41d   : > { %p1191_p11 = por %p1190_p10, %p1189_p9 }
 0x41e   : > { %p1187_p8 = pneg %p1186_p7 }
 0x420   : > { %p1192_p12 = pnand %p1191_p11, %p1187_p8 }
 0x422   : > { %1195 = shalt.err (!%p1192_p12)
}
 0x423   : > { %s1244_s3 = smov 128   ;;  %s1245_s4 = smov 8   ;;  %v765_v24 = vpop.f32.mrf.mxu1  ;;  %v835_v30 = vpop.permute.xlu1 %834 }
 0x424   : > { %1074 = dma.vmem_to_hbm [thread:$0]  (%p1334_p5), %s902_s1, 256, %s904_s2, %s870_s5, %s1244_s3, %s1244_s3, %s1245_s4   ;;  %v840_v36 = vpop.permute.xlu2 %839  ;;  %v845_v45 = vpop.permute.xlu0 %844 }
 0x425   : > { %s1071_s29 = sshll.u32 %s1347_s21, 5 }
 0x426   : > { %s350_s14 = scalar_lea.vmem %s1566_s9, %s1071_s29 }
 0x42b   : > { %v768_v28 = vpop.f32.mrf.mxu1  ;;  %v850_v53 = vpop.permute.xlu1 %849 }
 0x433   : > { %v771_v38 = vpop.f32.mrf.mxu1 }
 0x43b   : > { %v774_v47 = vpop.f32.mrf.mxu1 }
 0x467   : > { %v812_v25 = vpop.f32.mrf.mxu2 }
 0x46f   : > { %v815_v31 = vpop.f32.mrf.mxu2 }
 0x477   : > { %v818_v40 = vpop.f32.mrf.mxu2 }
 0x479   : > { %v724_v26 = vpop.f32.mrf.mxu0 }
 0x47a   : > { %v766_v27 = vadd.f32 %v765_v24, %v724_v26 }
 0x47c   : > { %v824_v29 = vadd.f32 %v812_v25, %v766_v27 }
 0x47e   : > { %v852_v32 = vadd.f32 %v835_v30, %v824_v29 }
 0x47f   : > { %v821_v50 = vpop.f32.mrf.mxu2 }
 0x480   : > { %v856_v33 = vmax.f32 %v852_v32, 0.0 }
 0x481   : > { %v727_v34 = vpop.f32.mrf.mxu0 }
 0x482   : > { %860 = vst.msk [vmem:[%s350_s14] sm:$0xff] %vm456_vm4, %v856_v33  ;;  %v769_v35 = vadd.f32 %v768_v28, %v727_v34 }
 0x484   : > { %v825_v37 = vadd.f32 %v815_v31, %v769_v35 }
 0x486   : > { %v853_v39 = vadd.f32 %v840_v36, %v825_v37 }
 0x488   : > { %v857_v41 = vmax.f32 %v853_v39, 0.0 }
 0x489   : > { %v730_v42 = vpop.f32.mrf.mxu0 }
 0x48a   : > { %v772_v43 = vadd.f32 %v771_v38, %v730_v42  ;;  %861 = vst.msk [vmem:[%s350_s14 + $0x8] sm:$0xff] %vm456_vm4, %v857_v41 }
 0x48c   : > { %v826_v44 = vadd.f32 %v818_v40, %v772_v43 }
 0x48e   : > { %v854_v46 = vadd.f32 %v845_v45, %v826_v44 }
 0x490   : > { %v858_v48 = vmax.f32 %v854_v46, 0.0 }
 0x491   : > { %v733_v49 = vpop.f32.mrf.mxu0 }
 0x492   : > { %862 = vst.msk [vmem:[%s350_s14 + $0x10] sm:$0xff] %vm456_vm4, %v858_v48  ;;  %v775_v51 = vadd.f32 %v774_v47, %v733_v49 }
 0x494   : > { %v827_v52 = vadd.f32 %v821_v50, %v775_v51 }
 0x496   : > { %v855_v54 = vadd.f32 %v850_v53, %v827_v52 }
 0x498   : > { %v859_v55 = vmax.f32 %v855_v54, 0.0 }
 0x49a   : > { %863 = vst.msk [vmem:[%s350_s14 + $0x18] sm:$0xff] %vm456_vm4, %v859_v55 }
 0x49b PF: > { %p1084_p5 = scmp.ge.s32.totalorder %s1234_s12, 2  ;;  %s921_s19 = sand.u32 1, %s1222_s30  }
 0x49c   : > { %s922_s21 = scalar_lea.sflag [#allocation4], %s921_s19 }
 0x49d   : > { %p1078_p13 = pnand %p1084_p5, %p1338_p6 }
 0x49f   : > { %p1079_p0 = pneg %p1078_p13 }
 0x4a1   : > { %1213 = dma.done.wait (%p1079_p0), %s922_s21, 128  }
 0x4a2   : > { %1215 = vsyncadd (%p1079_p0), %s922_s21, 4294967168  ;;  %s932_s22 = scalar_lea.sflag [#allocation6], %s921_s19 }
 0x4a3   : > { %1217 = dma.done.wait (%p1079_p0), %s932_s22, 256  }
 0x4a4   : > { %1219 = vsyncadd (%p1079_p0), %s932_s22, 4294967040  ;;  %p23_p1 = scmp.ge.s32.totalorder %s1321_s15, 4   ;;  %s1586_s30 = smov %s1226_s10 }
 0x4a5   : > { %s1587_s10 = smov %s1230_s11  ;;  %s1588_s11 = smov %s1332_s18 }
 0x4a6   : > { %s1589_s12 = smov %s1321_s15  ;;  %25 = sbr.rel (!%p23_p1) target bundleno = 12 (0xc), region = 112 }
 0x4ab   :  { %946 = vsyncpa [#allocation4], 1 }
 0x4ac   :  { %948 = vsyncpa [#allocation4 + $0x1], 1 }
 0x4ad   :  { %949 = vsyncpa [#allocation6], 1 }
 0x4ae   :  { %951 = vsyncpa [#allocation6 + $0x1], 1 }

</bundles_post_ra>
